<compile_context>
chip_gen: v7x
topology: tpu7x:2x2x1
jax: 0.10.0
libtpu: 0.0.40
codegen_flags: <defaults>
</compile_context>

<pallas_src>
import jax
import jax.numpy as jnp
from jax import lax
from jax.experimental import pallas as pl
from jax.experimental.pallas import tpu as pltpu

IN_DIM = 24    # observation size
HID_DIM = 60   # hidden units (PyTorch)
OUT_DIM = 4    # actions (PyTorch)
HID_PAD = 64   # 60 -> 64 : sublane aligned hidden dim
LANE = 128
TB_MAX = 8192  # max batch-tile rows (see VMEM note above)


def _round_up(n: int, m: int) -> int:
    return ((n + m - 1) // m) * m


def _cdiv(a: int, b: int) -> int:
    return (a + b - 1) // b


def policy_kernel(x_ref, w1_ref, w2_ref, o_ref):
    # x_ref : (tb, 24) f32   natural layout (contiguous HBM DMA)
    # w1_ref: (64, 24) f32   VMEM-resident, rows 60..63 are zero padding
    # w2_ref: (4, 64)  f32   VMEM-resident, cols 60..63 are zero padding
    # o_ref : (4, tb)  f32   batch on lanes -> lane-dense store
    # h^T = W1 @ x^T : contract the last axis of both operands (q@k^T form),
    # so x never needs an explicit wrapper-side transpose.
    hT = lax.dot_general(
        w1_ref[...], x_ref[...],
        dimension_numbers=(((1,), (1,)), ((), ())),
        preferred_element_type=jnp.float32)                        # (64, tb)
    hT = jnp.maximum(hT, 0.0)                                      # ReLU
    a = jnp.dot(w2_ref[...], hT, preferred_element_type=jnp.float32)  # (4, tb)
    o_ref[...] = jnp.tanh(a)                                       # Tanh


def prep_weights(w1, w2):
    """PyTorch-convention weights (out, in) -> zero-padded f32 kernel operands."""
    w1p = jnp.pad(w1.astype(jnp.float32), ((0, HID_PAD - HID_DIM), (0, 0)))   # (64, 24)
    w2p = jnp.pad(w2.astype(jnp.float32), ((0, 0), (0, HID_PAD - HID_DIM)))   # (4, 64)
    return w1p, w2p


@jax.jit
def policy_forward(x, w1p, w2p):
    """x: (B, 24) f32, prepped weights -> (B, 4) f32."""
    B = x.shape[0]

    # Balanced batch tiling: n near-equal tiles (<= TB_MAX rows each, multiples of
    # 128), bounding padding waste to < 128 rows per tile.  B > TB_MAX gives >= 2
    # tiles so v7x megacore sharding engages.
    B128 = _round_up(max(B, 1), LANE)
    n = _cdiv(B128, TB_MAX)
    tb = _round_up(_cdiv(B, n), LANE)
    Bp = n * tb

    xp = x.astype(jnp.float32)
    if Bp != B:
        xp = jnp.pad(xp, ((0, Bp - B), (0, 0)))   # zero rows -> tanh(0)=0, sliced off

    cost = pl.CostEstimate(
        flops=2 * Bp * (IN_DIM * HID_DIM + HID_DIM * OUT_DIM),
        transcendentals=OUT_DIM * Bp,  # tanh
        bytes_accessed=(Bp * IN_DIM * 4            # x read
                        + Bp * OUT_DIM * 4         # output write
                        + HID_PAD * IN_DIM * 4     # W1
                        + OUT_DIM * HID_PAD * 4),  # W2
    )

    out = pl.pallas_call(
        policy_kernel,
        out_shape=jax.ShapeDtypeStruct((OUT_DIM, Bp), jnp.float32),
        grid=(n,),
        in_specs=[
            pl.BlockSpec((tb, IN_DIM), lambda i: (i, 0)),        # x tile: pipelined over batch
            pl.BlockSpec((HID_PAD, IN_DIM), lambda i: (0, 0)),   # W1: VMEM-resident
            pl.BlockSpec((OUT_DIM, HID_PAD), lambda i: (0, 0)),  # W2: VMEM-resident
        ],
        out_specs=pl.BlockSpec((OUT_DIM, tb), lambda i: (0, i)),
        compiler_params=pltpu.CompilerParams(
            dimension_semantics=("parallel",),  # batch tiles independent -> v7x megacore
        ),
        cost_estimate=cost,
    )(xp, w1p, w2p)

    # Keep PyTorch's (B, 4) output convention; callers wanting batch-last can use
    # out[:, :B] directly to skip this final (cheap, 16 B/row) transpose.
    return out[:, :B].T


def init_params(key):
    """nn.Linear default init: U(-1/sqrt(fan_in), 1/sqrt(fan_in)), bias=False."""
    k1, k2 = jax.random.split(key)
    b1 = 1.0 / jnp.sqrt(jnp.float32(IN_DIM))
    b2 = 1.0 / jnp.sqrt(jnp.float32(HID_DIM))
    # Stored in PyTorch convention (out, in); padded by prep_weights.
    w1 = jax.random.uniform(k1, (HID_DIM, IN_DIM), jnp.float32, -b1, b1)
    w2 = jax.random.uniform(k2, (OUT_DIM, HID_DIM), jnp.float32, -b2, b2)
    return w1, w2


def _reference(x, w1, w2):
    # Pure f32 reference of the PyTorch forward semantics.
    return jnp.tanh(jnp.maximum(x @ w1.T, 0.0) @ w2.T)


# TODO(synk): the child-initialization noise + Dropout in Policy.__init__ mutates
# parameters at construction time and is not part of forward(); it is not modeled here.

if __name__ == "__main__":
    key = jax.random.PRNGKey(0)
    kx, kx2, kp = jax.random.split(key, 3)

    w1, w2 = init_params(kp)
    w1p, w2p = prep_weights(w1, w2)

    # Small-batch case (matches the original module's typical use).
    batch = 8
    x = jax.random.normal(kx, (batch, IN_DIM), dtype=jnp.float32)
    out = jax.block_until_ready(policy_forward(x, w1p, w2p))
    ref = _reference(x, w1, w2)
    assert out.shape == (batch, OUT_DIM)
    # f32 end-to-end; tolerance covers MXU default-precision matmul passes.
    assert jnp.allclose(out, ref, atol=2e-2, rtol=2e-2), float(jnp.max(jnp.abs(out - ref)))

    # Exercise the batch-padding path (B not a multiple of 128).
    batch2 = 200
    x2 = jax.random.normal(kx2, (batch2, IN_DIM), dtype=jnp.float32)
    out2 = jax.block_until_ready(policy_forward(x2, w1p, w2p))
    ref2 = _reference(x2, w1, w2)
    assert out2.shape == (batch2, OUT_DIM)
    assert jnp.allclose(out2, ref2, atol=2e-2, rtol=2e-2), float(jnp.max(jnp.abs(out2 - ref2)))

    print("KERNEL_OK")
</pallas_src>

<mosaic_0001>
module attributes {stable_mosaic.version = 11 : i64} {
  func.func @policy_kernel(%arg0: i32, %arg1: memref<128x24xf32, #tpu.memory_space<vmem>>, %arg2: memref<64x24xf32, #tpu.memory_space<vmem>>, %arg3: memref<4x64xf32, #tpu.memory_space<vmem>>, %arg4: memref<4x128xf32, #tpu.memory_space<vmem>>) attributes {dimension_semantics = [#tpu.dimension_semantics<parallel>], iteration_bounds = array<i64: 1>, scalar_prefetch = 0 : i64, scratch_operands = 0 : i64, tpu.core_type = #tpu.core_type<tc>, window_params = [{transform_indices = @transform_0, window_bounds = array<i64: 128, 24>}, {pipeline_mode = #tpu.pipeline_mode<synchronous>, transform_indices = @transform_1, window_bounds = array<i64: 64, 24>}, {pipeline_mode = #tpu.pipeline_mode<synchronous>, transform_indices = @transform_2, window_bounds = array<i64: 4, 64>}, {transform_indices = @transform_3, window_bounds = array<i64: 4, 128>}]} {
    %c0 = arith.constant 0 : index
    %c0_0 = arith.constant 0 : index
    %0 = vector.load %arg2[%c0, %c0_0] : memref<64x24xf32, #tpu.memory_space<vmem>>, vector<64x24xf32>
    %c0_1 = arith.constant 0 : index
    %c0_2 = arith.constant 0 : index
    %1 = vector.load %arg1[%c0_1, %c0_2] : memref<128x24xf32, #tpu.memory_space<vmem>>, vector<128x24xf32>
    %cst = arith.constant dense<0.000000e+00> : vector<64x128xf32>
    %2 = tpu.matmul %0, %1, %cst {dimension_numbers = #tpu.dot_dimension_numbers<[1], [1], [0], [0], [0, 0, 1, 0], [], []>} : vector<64x24xf32>, vector<128x24xf32>, vector<64x128xf32> -> vector<64x128xf32>
    %cst_3 = arith.constant 0.000000e+00 : f32
    %3 = vector.broadcast %cst_3 : f32 to vector<64x128xf32>
    %4 = arith.maximumf %2, %3 : vector<64x128xf32>
    %c0_4 = arith.constant 0 : index
    %c0_5 = arith.constant 0 : index
    %5 = vector.load %arg3[%c0_4, %c0_5] : memref<4x64xf32, #tpu.memory_space<vmem>>, vector<4x64xf32>
    %cst_6 = arith.constant dense<0.000000e+00> : vector<4x128xf32>
    %6 = tpu.matmul %5, %4, %cst_6 {dimension_numbers = #tpu.dot_dimension_numbers<[1], [0], [0], [1], [0, 0, 1, 1], [], []>} : vector<4x64xf32>, vector<64x128xf32>, vector<4x128xf32> -> vector<4x128xf32>
    %7 = math.tanh %6 : vector<4x128xf32>
    %c0_7 = arith.constant 0 : index
    %c0_8 = arith.constant 0 : index
    %8 = vector.load %arg4[%c0_7, %c0_8] : memref<4x128xf32, #tpu.memory_space<vmem>>, vector<4x128xf32>
    tpu.vector_store %arg4[%c0_7, %c0_8], %7 {strides = array<i32>} : memref<4x128xf32, #tpu.memory_space<vmem>>, vector<4x128xf32>,
    return
  }
  func.func @transform_0(%arg0: i32) -> (i32, i32) {
    %c0_i32 = arith.constant 0 : i32
    %c0_i32_0 = arith.constant 0 : i32
    return %arg0, %c0_i32 : i32, i32
  }
  func.func @transform_1(%arg0: i32) -> (i32, i32) {
    %c0_i32 = arith.constant 0 : i32
    %c0_i32_0 = arith.constant 0 : i32
    %c0_i32_1 = arith.constant 0 : i32
    return %c0_i32, %c0_i32_0 : i32, i32
  }
  func.func @transform_2(%arg0: i32) -> (i32, i32) {
    %c0_i32 = arith.constant 0 : i32
    %c0_i32_0 = arith.constant 0 : i32
    %c0_i32_1 = arith.constant 0 : i32
    return %c0_i32, %c0_i32_0 : i32, i32
  }
  func.func @transform_3(%arg0: i32) -> (i32, i32) {
    %c0_i32 = arith.constant 0 : i32
    %c0_i32_0 = arith.constant 0 : i32
    return %c0_i32, %arg0 : i32, i32
  }
}

</mosaic_0001>

<bundles_post_ra>
// kernel: policy_forward.1
= control target key start
LH: loop header
LB: loop body
LE: loop exit
PB: predicated region body
PF: predicated region fallthrough
CT: control target
= control target key end

     0   :  { %vm38_vm0 = vcmask 195584   ;;  %v491_v33 = vmov 0.0|0.0   ;;  %vm492_vm2 = vmmov 0   ;;  %v493_v34 = vmov 0.0   ;;  %s638_s0 = inlined_call_operand.vmem [shape: f32[128,24], index: 0, kind: input, shape index: {}]   ;;  %s639_s1 = inlined_call_operand.vmem [shape: f32[64,24], index: 1, kind: input, shape index: {}]   ;;  %s640_s2 = inlined_call_operand.vmem [shape: f32[4,64], index: 2, kind: input, shape index: {}]   ;;  %s641_s3 = inlined_call_operand.vmem [shape: f32[4,128], index: 3, kind: output, shape index: {}]  }
   0x1   :  { %v22_v0 = vld [vmem:[%s638_s0] sm:$0xff]  ;;  %v23_v1 = vld [vmem:[%s638_s0 + $0x8] sm:$0xff]  ;;  %vm522_vm1 = vmpackc.low %vm38_vm0, %vm38_vm0  ;;  %474 = vmatprep.subr.bf16.mxu1 %v491_v33  ;;  %423 = vmatprep.mubr.msk.f32.mxu1 %vm492_vm2, %v493_v34  ;;  %vm225_vm3 = vcmask 523264  }
   0x2   :  { %v426_v3 = vpack.c.bf16 %v23_v1, %v22_v0  ;;  %v24_v4 = vld [vmem:[%s638_s0 + $0x10] sm:$0xff]  ;;  %v25_v5 = vld [vmem:[%s638_s0 + $0x18] sm:$0xff]  ;;  %v14_v7 = vld [vmem:[%s639_s1] sm:$0xff] }
   0x3   :  { %v432_v6 = vpack.c.bf16 %v25_v5, %v24_v4  ;;  %v26_v8 = vld [vmem:[%s638_s0 + $0x20] sm:$0xff]  ;;  %v27_v9 = vld [vmem:[%s638_s0 + $0x28] sm:$0xff]  ;;  %395 = vmatprep.mubr.msk.f32.mxu0 %vm38_vm0, %v14_v7  ;;  %v28_v11 = vld [vmem:[%s638_s0 + $0x30] sm:$0xff] }
   0x4   :  { %428 = vmatprep.subr.msk.bf16.mxu0 %vm522_vm1, %v426_v3  ;;  %v438_v10 = vpack.c.bf16 %v27_v9, %v26_v8  ;;  %v29_v12 = vld [vmem:[%s638_s0 + $0x38] sm:$0xff]  ;;  %v30_v14 = vld [vmem:[%s638_s0 + $0x40] sm:$0xff]  ;;  %v31_v15 = vld [vmem:[%s638_s0 + $0x48] sm:$0xff] }
   0x5   :  { %431 = vmatpush3.bf16.xpose.msk.msra.mxu0 %vm522_vm1, %v426_v3  ;;  %v444_v13 = vpack.c.bf16 %v29_v12, %v28_v11  ;;  %v450_v16 = vpack.c.bf16 %v31_v15, %v30_v14  ;;  %v32_v17 = vld [vmem:[%s638_s0 + $0x50] sm:$0xff]  ;;  %v33_v18 = vld [vmem:[%s638_s0 + $0x58] sm:$0xff]  ;;  %v34_v20 = vld [vmem:[%s638_s0 + $0x60] sm:$0xff] }
   0x6   :  { %434 = vmatprep.subr.msk.bf16.mxu0 %vm522_vm1, %v432_v6  ;;  %v456_v19 = vpack.c.bf16 %v33_v18, %v32_v17  ;;  %v35_v21 = vld [vmem:[%s638_s0 + $0x68] sm:$0xff]  ;;  %v36_v23 = vld [vmem:[%s638_s0 + $0x70] sm:$0xff]  ;;  %v37_v24 = vld [vmem:[%s638_s0 + $0x78] sm:$0xff] }
   0x7   :  { %v462_v22 = vpack.c.bf16 %v35_v21, %v34_v20  ;;  %v468_v25 = vpack.c.bf16 %v37_v24, %v36_v23  ;;  %v15_v26 = vld [vmem:[%s639_s1 + $0x8] sm:$0xff]  ;;  %v16_v27 = vld [vmem:[%s639_s1 + $0x10] sm:$0xff]  ;;  %v17_v28 = vld [vmem:[%s639_s1 + $0x18] sm:$0xff] }
   0x8   :  { %v18_v29 = vld [vmem:[%s639_s1 + $0x20] sm:$0xff]  ;;  %v19_v30 = vld [vmem:[%s639_s1 + $0x28] sm:$0xff]  ;;  %v20_v31 = vld [vmem:[%s639_s1 + $0x30] sm:$0xff] }
   0x9   :  { %v21_v32 = vld [vmem:[%s639_s1 + $0x38] sm:$0xff]  ;;  %v224_v55 = vld [vmem:[%s640_s2] sm:$0xf] }
   0xd   :  { %437 = vmatpush3.bf16.xpose.msk.msra.mxu0 %vm522_vm1, %v432_v6 }
   0xe   :  { %440 = vmatprep.subr.msk.bf16.mxu0 %vm522_vm1, %v438_v10 }
  0x15   :  { %443 = vmatpush3.bf16.xpose.msk.msra.mxu0 %vm522_vm1, %v438_v10 }
  0x16   :  { %446 = vmatprep.subr.msk.bf16.mxu0 %vm522_vm1, %v444_v13 }
  0x1d   :  { %449 = vmatpush3.bf16.xpose.msk.msra.mxu0 %vm522_vm1, %v444_v13 }
  0x1e   :  { %452 = vmatprep.subr.msk.bf16.mxu0 %vm522_vm1, %v450_v16 }
  0x25   :  { %455 = vmatpush3.bf16.xpose.msk.msra.mxu0 %vm522_vm1, %v450_v16 }
  0x26   :  { %458 = vmatprep.subr.msk.bf16.mxu0 %vm522_vm1, %v456_v19 }
  0x2d   :  { %461 = vmatpush3.bf16.xpose.msk.msra.mxu0 %vm522_vm1, %v456_v19 }
  0x2e   :  { %464 = vmatprep.subr.msk.bf16.mxu0 %vm522_vm1, %v462_v22 }
  0x35   :  { %467 = vmatpush3.bf16.xpose.msk.msra.mxu0 %vm522_vm1, %v462_v22 }
  0x36   :  { %470 = vmatprep.subr.msk.bf16.mxu0 %vm522_vm1, %v468_v25 }
  0x3d   :  { %473 = vmatpush3.bf16.xpose.msk.msra.mxu0 %vm522_vm1, %v468_v25 }
  0x44   :  { %396 = vmatmul.mubr.msk.f32.vlgmr.msra.gmra.mrb[0].mxu0 %vm38_vm0, %v15_v26 }
  0x45   :  { %398 = vmatprep.mubr.msk.f32.mxu0 %vm38_vm0, %v16_v27 }
  0x48   :  { %399 = vmatmul.mubr.msk.f32.gmra.mrb[2].mxu0 %vm38_vm0, %v17_v28 }
  0x49   :  { %401 = vmatprep.mubr.msk.f32.mxu0 %vm38_vm0, %v18_v29 }
  0x4c   :  { %402 = vmatmul.mubr.msk.f32.gmra.mrb[4].mxu0 %vm38_vm0, %v19_v30 }
  0x4d   :  { %404 = vmatprep.mubr.msk.f32.mxu0 %vm38_vm0, %v20_v31 }
  0x50   :  { %405 = vmatmul.mubr.msk.f32.gmra.mrb[6].mxu0 %vm38_vm0, %v21_v32 }
 0x117   :  { %v397_v35 = vpop.f32.mrb[0].mxu0 }
 0x118   :  { %v217_v36 = vmax.f32 %v397_v35, 0.0  ;;  %v177_v37 = vpop.f32.mrb[1].mxu0 }
 0x119   :  { %v216_v38 = vmax.f32 %v177_v37, 0.0 }
 0x11b   :  { %v400_v39 = vpop.f32.mrb[2].mxu0  ;;  %v475_v40 = vpack.c.bf16 %v217_v36, %v216_v38 }
 0x11c   :  { %v219_v41 = vmax.f32 %v400_v39, 0.0  ;;  %v187_v42 = vpop.f32.mrb[3].mxu0 }
 0x11d   :  { %v218_v43 = vmax.f32 %v187_v42, 0.0  ;;  %476 = vmatpush3.bf16.msra.mxu1 %v475_v40 }
 0x11e   :  { %477 = vmatprep.subr.bf16.mxu1 %v491_v33 }
 0x11f   :  { %v478_v44 = vpack.c.bf16 %v219_v41, %v218_v43  ;;  %v403_v45 = vpop.f32.mrb[4].mxu0 }
 0x120   :  { %v221_v46 = vmax.f32 %v403_v45, 0.0  ;;  %v197_v47 = vpop.f32.mrb[5].mxu0 }
 0x121   :  { %v220_v48 = vmax.f32 %v197_v47, 0.0  ;;  %479 = vmatpush3.bf16.msra.mxu1 %v478_v44 }
 0x122   :  { %480 = vmatprep.subr.bf16.mxu1 %v491_v33 }
 0x123   :  { %v481_v49 = vpack.c.bf16 %v221_v46, %v220_v48  ;;  %v406_v50 = vpop.f32.mrb[6].mxu0 }
 0x124   :  { %v223_v51 = vmax.f32 %v406_v50, 0.0  ;;  %v207_v52 = vpop.f32.mrb[7].mxu0 }
 0x125   :  { %v222_v53 = vmax.f32 %v207_v52, 0.0  ;;  %482 = vmatpush3.bf16.msra.mxu1 %v481_v49 }
 0x126   :  { %483 = vmatprep.subr.bf16.mxu1 %v491_v33 }
 0x127   :  { %v484_v54 = vpack.c.bf16 %v223_v51, %v222_v53 }
 0x129   :  { %485 = vmatpush3.bf16.msra.mxu1 %v484_v54 }
 0x12c   :  { %424 = vmatmul.mubr.msk.f32.vlgmr.msra.gmra.mrb[0].mxu1 %vm225_vm3, %v224_v55 }
 0x1ff   :  { %v295_v56 = vpop.f32.mrb[0].mxu1 }
 0x200   :  { %489 = vtanh.f32 %v295_v56  ;;  %v425_v57 = vpop.f32.mrb[1].mxu1 }
 0x20a   :  { %v490_v58 = vpop.eup %489 }
 0x20b   :  { %300 = vst [vmem:[%s641_s3] sm:$0xf] %v490_v58 }

</bundles_post_ra>
